<compile_context>
chip_gen: v5e
topology: v5e:2x2
jax: 0.10.0
libtpu: 0.0.40
codegen_flags: <defaults>
</compile_context>

<pallas_src>
import functools

import jax
import jax.numpy as jnp
from jax import lax
from jax.experimental import pallas as pl
from jax.experimental.pallas import tpu as pltpu

_EPS = 1e-12  # torch.nn.functional.normalize default eps


def _l2_normalize(x):
    # x * rsqrt(max(||x||^2, eps^2)) == x / max(||x||, eps)  (rsqrt -> EUP slot)
    ssq = jnp.sum(x * x, axis=1, keepdims=True)
    return x * lax.rsqrt(jnp.maximum(ssq, _EPS * _EPS))


# ---------------------------------------------------------------------------
# Shared math helpers (used inside kernels)
# ---------------------------------------------------------------------------

_DN = (((1,), (1,)), ((), ()))  # contract the feature (lane) dim: x @ y.T


def _pair_loss_sum(a, b, inv_t):
    """Sum over the 2B rows of -log(pos/neg) for one NT-Xent pair.

    a, b: (B, F) L2-normalized f32 views.  Returns (1, 1) f32 un-normalized
    sum; the caller divides by 2B.  Only 3 Grams (Saa, Sab, Sbb): Sba == Sab^T.
    """
    a_lo = a.astype(jnp.bfloat16)            # bf16 MXU operands, f32 accumulation
    b_lo = b.astype(jnp.bfloat16)

    saa = lax.dot_general(a_lo, a_lo, _DN, preferred_element_type=jnp.float32)
    sab = lax.dot_general(a_lo, b_lo, _DN, preferred_element_type=jnp.float32)
    sbb = lax.dot_general(b_lo, b_lo, _DN, preferred_element_type=jnp.float32)

    e_aa = jnp.exp(saa * inv_t)
    e_ab = jnp.exp(sab * inv_t)
    e_bb = jnp.exp(sbb * inv_t)

    # self terms from the bf16-cast operands -> matches the Gram diagonal that
    # is inside the row sums (products of bf16 are exact in f32).
    a32 = a_lo.astype(jnp.float32)
    b32 = b_lo.astype(jnp.float32)
    self_a = jnp.exp(jnp.sum(a32 * a32, axis=-1, keepdims=True) * inv_t)   # (B,1)
    self_b = jnp.exp(jnp.sum(b32 * b32, axis=-1, keepdims=True) * inv_t)   # (B,1)

    # neg_b cross term = column-sum of e_ab (== row-sum of e_ab^T), no 4th Gram.
    cross_b = jnp.sum(jnp.transpose(e_ab), axis=-1, keepdims=True)         # (B,1)

    neg_a = (jnp.sum(e_aa, axis=-1, keepdims=True)
             + jnp.sum(e_ab, axis=-1, keepdims=True) - self_a)             # (B,1)
    neg_b = (jnp.sum(e_bb, axis=-1, keepdims=True) + cross_b - self_b)     # (B,1)

    # -log(pos/neg) folded: log(neg_a*neg_b) - 2*<a,b>/t  (pos exps never built)
    dot_pos = jnp.sum(a * b, axis=-1, keepdims=True)                       # (B,1)
    per_row = jnp.log(neg_a * neg_b) - 2.0 * dot_pos * inv_t               # (B,1)
    return jnp.sum(per_row, axis=0, keepdims=True)                         # (1,1)


def _intra_sum(wt, ws, st, ss, inv_it):
    """Un-normalized intra-loss sum over 4*B rows. Views already L2-normalized."""
    views = (wt, ws, st, ss)
    n_views = 4

    dots, exps = {}, {}
    for ai in range(n_views):
        for di in range(ai + 1, n_views):            # 6 unique pairs (dedup)
            d = jnp.sum(views[ai] * views[di], axis=-1, keepdims=True)     # (B,1)
            dots[(ai, di)] = d
            exps[(ai, di)] = jnp.exp(d * inv_it)

    def _key(i, j):
        return (i, j) if i < j else (j, i)

    total = jnp.zeros((1, 1), jnp.float32)
    for ai in range(n_views):
        neg = None
        for di in range(n_views):
            if di == ai:
                continue
            e = exps[_key(ai, di)]
            neg = e if neg is None else neg + e
        pos_dot = dots[_key(ai, (ai + 2) % n_views)]   # wt<->st, ws<->ss
        per_row = jnp.log(neg) - pos_dot * inv_it      # -log(pos/neg), folded
        total = total + jnp.sum(per_row, axis=0, keepdims=True)
    return total                                        # (1,1)


# ---------------------------------------------------------------------------
# Fused gridless kernel (small / medium B): everything in one invocation
# ---------------------------------------------------------------------------

def _diverse_loss_kernel(wt_ref, wf_ref, ws_ref, st_ref, sf_ref, ss_ref,
                         o_ref, res_ref, *, t, intra_t):
    wt = _l2_normalize(wt_ref[...].astype(jnp.float32))
    wf = _l2_normalize(wf_ref[...].astype(jnp.float32))
    ws = _l2_normalize(ws_ref[...].astype(jnp.float32))
    st = _l2_normalize(st_ref[...].astype(jnp.float32))
    sf = _l2_normalize(sf_ref[...].astype(jnp.float32))
    ss = _l2_normalize(ss_ref[...].astype(jnp.float32))

    B = wt.shape[0]
    inv_t = 1.0 / t
    inv_it = 1.0 / intra_t

    pair_sum = (_pair_loss_sum(wt, st, inv_t)
                + _pair_loss_sum(wf, sf, inv_t)
                + _pair_loss_sum(ws, ss, inv_t))
    pair_loss = pair_sum / (2.0 * B)

    intra = _intra_sum(wt, ws, st, ss, inv_it) / (4.0 * B)

    res_ref[...] = pair_loss + intra          # (1,1) VMEM staging
    o_ref[0, 0] = res_ref[0, 0]               # scalar write through SMEM


def _diverse_loss_fused(w_t, w_f, w_s, s_t, s_f, s_s, t, intra_t):
    B, F = w_t.shape
    kernel = functools.partial(_diverse_loss_kernel, t=t, intra_t=intra_t)
    vmem = pl.BlockSpec(memory_space=pltpu.MemorySpace.VMEM)
    smem = pl.BlockSpec(memory_space=pltpu.MemorySpace.SMEM)

    # Raise the scoped-VMEM cap only when the (B,B) sim/exp intermediates would
    # exceed the smallest default (v5e: 16 MiB); capped at 64 MiB (v7x physical).
    est = 6 * B * F * 4 + 10 * B * B * 4 + (1 << 20)
    cp = None
    if est > (12 << 20):
        cp = pltpu.CompilerParams(vmem_limit_bytes=min(est, 64 << 20))

    out = pl.pallas_call(
        kernel,
        out_shape=jax.ShapeDtypeStruct((1, 1), jnp.float32),
        in_specs=[vmem] * 6,
        out_specs=smem,
        scratch_shapes=[pltpu.VMEM((1, 1), jnp.float32)],
        compiler_params=cp,
    )(w_t, w_f, w_s, s_t, s_f, s_s)
    return out[0, 0]


# ---------------------------------------------------------------------------
# Row-tiled, pair-parallel grid path (large B / v7x)
# ---------------------------------------------------------------------------

def _pair_rows_kernel(a_tile_ref, b_tile_ref, a_full_ref, b_full_ref,
                      o_ref, acc_ref, *, inv_t):
    r = pl.program_id(1)

    @pl.when(r == 0)
    def _init():
        acc_ref[...] = jnp.zeros_like(acc_ref)

    a_t = a_tile_ref[0]          # (TB, F)  pre-normalized f32 row tile
    b_t = b_tile_ref[0]          # (TB, F)
    a_f = a_full_ref[0]          # (B, F)   full resident view
    b_f = b_full_ref[0]          # (B, F)

    at_lo = a_t.astype(jnp.bfloat16)
    bt_lo = b_t.astype(jnp.bfloat16)
    af_lo = a_f.astype(jnp.bfloat16)
    bf_lo = b_f.astype(jnp.bfloat16)

    # 4 Grams here: the Sab^T dedup would need a second pass over row tiles,
    # so the streaming variant computes Sba for its own rows directly.
    saa = lax.dot_general(at_lo, af_lo, _DN, preferred_element_type=jnp.float32)
    sab = lax.dot_general(at_lo, bf_lo, _DN, preferred_element_type=jnp.float32)
    sba = lax.dot_general(bt_lo, af_lo, _DN, preferred_element_type=jnp.float32)
    sbb = lax.dot_general(bt_lo, bf_lo, _DN, preferred_element_type=jnp.float32)

    at32 = at_lo.astype(jnp.float32)
    bt32 = bt_lo.astype(jnp.float32)
    self_a = jnp.exp(jnp.sum(at32 * at32, axis=-1, keepdims=True) * inv_t)   # (TB,1)
    self_b = jnp.exp(jnp.sum(bt32 * bt32, axis=-1, keepdims=True) * inv_t)

    neg_a = (jnp.sum(jnp.exp(saa * inv_t), axis=-1, keepdims=True)
             + jnp.sum(jnp.exp(sab * inv_t), axis=-1, keepdims=True) - self_a)
    neg_b = (jnp.sum(jnp.exp(sbb * inv_t), axis=-1, keepdims=True)
             + jnp.sum(jnp.exp(sba * inv_t), axis=-1, keepdims=True) - self_b)

    dot_pos = jnp.sum(a_t * b_t, axis=-1, keepdims=True)
    per_row = jnp.log(neg_a * neg_b) - 2.0 * dot_pos * inv_t
    acc_ref[...] += jnp.sum(per_row, axis=0, keepdims=True)

    @pl.when(r == pl.num_programs(1) - 1)
    def _fin():
        o_ref[...] = acc_ref[...].reshape((1, 1, 1))


def _intra_only_kernel(wt_ref, ws_ref, st_ref, ss_ref, o_ref, res_ref, *, intra_t):
    wt = _l2_normalize(wt_ref[...].astype(jnp.float32))
    ws = _l2_normalize(ws_ref[...].astype(jnp.float32))
    st = _l2_normalize(st_ref[...].astype(jnp.float32))
    ss = _l2_normalize(ss_ref[...].astype(jnp.float32))
    B = wt.shape[0]
    res_ref[...] = _intra_sum(wt, ws, st, ss, 1.0 / intra_t) / (4.0 * B)
    o_ref[0, 0] = res_ref[0, 0]


def _diverse_loss_tiled(w_t, w_f, w_s, s_t, s_f, s_s, t, intra_t, tb):
    B, F = w_t.shape
    if B % tb != 0:
        raise ValueError(f"row_block {tb} must divide batch {B}")
    n_t = B // tb

    # Normalize once on the wrapper side: this is a hoist across the B/TB grid
    # steps (and the 4 Grams per step) that reuse the same normalized views --
    # not the "pre-scale to save one in-kernel mul" anti-pattern.
    wt, wf, ws = (_l2_normalize(x) for x in (w_t, w_f, w_s))
    st, sf, ss = (_l2_normalize(x) for x in (s_t, s_f, s_s))
    lhs = jnp.stack([wt, wf, ws], axis=0)    # (3, B, F)
    rhs = jnp.stack([st, sf, ss], axis=0)    # (3, B, F)

    est = (2 * B * F * 4 + 2 * tb * F * 4) * 2 + 10 * tb * B * 4 + (1 << 20)
    cp_kwargs = dict(dimension_semantics=("parallel", "arbitrary"))
    if est > (12 << 20):
        cp_kwargs["vmem_limit_bytes"] = min(est, 64 << 20)

    pair_kernel = functools.partial(_pair_rows_kernel, inv_t=1.0 / t)
    pair_sums = pl.pallas_call(
        pair_kernel,
        out_shape=jax.ShapeDtypeStruct((3, 1, 1), jnp.float32),
        grid=(3, n_t),
        in_specs=[
            pl.BlockSpec((1, tb, F), lambda p, r: (p, r, 0)),   # LHS row tile
            pl.BlockSpec((1, tb, F), lambda p, r: (p, r, 0)),   # RHS row tile
            pl.BlockSpec((1, B, F), lambda p, r: (p, 0, 0)),    # LHS full view
            pl.BlockSpec((1, B, F), lambda p, r: (p, 0, 0)),    # RHS full view
        ],
        out_specs=pl.BlockSpec((1, 1, 1), lambda p, r: (p, 0, 0)),
        scratch_shapes=[pltpu.VMEM((1, 1), jnp.float32)],
        compiler_params=pltpu.CompilerParams(**cp_kwargs),
    )(lhs, rhs, lhs, rhs)
    pair_loss = jnp.sum(pair_sums) / (2.0 * B)

    intra_kernel = functools.partial(_intra_only_kernel, intra_t=intra_t)
    intra = pl.pallas_call(
        intra_kernel,
        out_shape=jax.ShapeDtypeStruct((1, 1), jnp.float32),
        in_specs=[pl.BlockSpec(memory_space=pltpu.MemorySpace.VMEM)] * 4,
        out_specs=pl.BlockSpec(memory_space=pltpu.MemorySpace.SMEM),
        scratch_shapes=[pltpu.VMEM((1, 1), jnp.float32)],
    )(w_t, w_s, s_t, s_s)[0, 0]

    return pair_loss + intra


# ---------------------------------------------------------------------------
# Public entry point
# ---------------------------------------------------------------------------

def diverse_loss(w_t, w_f, w_s, s_t, s_f, s_s, *,
                 temperature=0.5, intra_temperature=0.5, row_block=None):
    B, F = w_t.shape
    t = float(temperature)
    it = float(intra_temperature)

    if row_block is None and B > 1024:
        # (B,B) sim/exp intermediates start pressuring scoped VMEM -> stream rows.
        for cand in (512, 256, 128, 64, 32, 16, 8):
            if B % cand == 0:
                row_block = cand
                break

    if (row_block is not None and 0 < row_block < B
            and B % row_block == 0 and row_block % 8 == 0):
        return _diverse_loss_tiled(w_t, w_f, w_s, s_t, s_f, s_s, t, it, row_block)
    return _diverse_loss_fused(w_t, w_f, w_s, s_t, s_f, s_s, t, it)


# ---------------------------------------------------------------------------
# Pure-JAX (f32) reference transcription of the PyTorch module
# ---------------------------------------------------------------------------

def _reference(w_t, w_f, w_s, s_t, s_f, s_s, t, intra_t):
    def norm(x):
        return x / jnp.maximum(jnp.linalg.norm(x, axis=1, keepdims=True), _EPS)

    def pair(a, b):
        a, b = norm(a), norm(b)
        out = jnp.concatenate([a, b], 0)
        n = out.shape[0]
        sim = jnp.exp(out @ out.T / t)
        neg = jnp.sum(sim * (1.0 - jnp.eye(n)), -1)
        pos = jnp.exp(jnp.sum(a * b, -1) / t)
        pos = jnp.concatenate([pos, pos], 0)
        return jnp.mean(-jnp.log(pos / neg))

    def intra(wt, ws, st, ss):
        wt, ws, st, ss = norm(wt), norm(ws), norm(st), norm(ss)
        out = jnp.stack([wt, ws, st, ss], 0)                 # (4, B, F)
        cov = jnp.einsum('abf,dbf->adb', out, out)           # (4, 4, B)
        sim = jnp.exp(cov / intra_t)
        mask = ~jnp.eye(4, dtype=bool)
        neg = jnp.sum(sim * mask[:, :, None], axis=1)        # (4, B)
        out1 = jnp.stack([wt, ws], 0)
        out2 = jnp.stack([st, ss], 0)
        pos = jnp.exp(jnp.sum(out1 * out2, -1) / intra_t)    # (2, B)
        pos = jnp.concatenate([pos, pos], 0)                 # (4, B)
        return jnp.mean(-jnp.log(pos / neg))

    return pair(w_t, s_t) + pair(w_f, s_f) + pair(w_s, s_s) \
        + intra(w_t, w_s, s_t, s_s)


if __name__ == "__main__":
    TEMPERATURE = 0.5
    INTRA_TEMPERATURE = 0.5

    key = jax.random.PRNGKey(0)
    keys = jax.random.split(key, 12)

    # --- small case: fused gridless kernel ---------------------------------
    B, F = 8, 128
    feats = [jax.random.normal(k, (B, F), dtype=jnp.float32) for k in keys[:6]]
    out = diverse_loss(*feats, temperature=TEMPERATURE,
                       intra_temperature=INTRA_TEMPERATURE)
    out = jax.block_until_ready(out)
    ref = _reference(*feats, TEMPERATURE, INTRA_TEMPERATURE)
    # bf16 MXU operands shift the result by O(1e-3) relative vs. the pure-f32
    # reference; gate with a correspondingly looser tolerance.
    assert jnp.allclose(out, ref, rtol=5e-3, atol=2e-3), (out, ref)

    # --- medium case: exercises the row-tiled, pair-parallel grid path ------
    B2, F2 = 256, 128
    feats2 = [jax.random.normal(k, (B2, F2), dtype=jnp.float32) for k in keys[6:]]
    out2 = diverse_loss(*feats2, temperature=TEMPERATURE,
                        intra_temperature=INTRA_TEMPERATURE, row_block=128)
    out2 = jax.block_until_ready(out2)
    ref2 = _reference(*feats2, TEMPERATURE, INTRA_TEMPERATURE)
    assert jnp.allclose(out2, ref2, rtol=5e-3, atol=5e-3), (out2, ref2)

    print("KERNEL_OK")
</pallas_src>

<mosaic_0001>
module attributes {stable_mosaic.version = 11 : i64} {
  func.func @_diverse_loss_kernel(%arg0: memref<8x128xf32, #tpu.memory_space<vmem>>, %arg1: memref<8x128xf32, #tpu.memory_space<vmem>>, %arg2: memref<8x128xf32, #tpu.memory_space<vmem>>, %arg3: memref<8x128xf32, #tpu.memory_space<vmem>>, %arg4: memref<8x128xf32, #tpu.memory_space<vmem>>, %arg5: memref<8x128xf32, #tpu.memory_space<vmem>>, %arg6: memref<1x1xf32, #tpu.memory_space<smem>>, %arg7: memref<1x1xf32, #tpu.memory_space<vmem>>) attributes {dimension_semantics = [], scalar_prefetch = 0 : i64, scratch_operands = 1 : i64, tpu.core_type = #tpu.core_type<tc>} {
    %c0 = arith.constant 0 : index
    %c0_0 = arith.constant 0 : index
    %0 = vector.load %arg0[%c0, %c0_0] : memref<8x128xf32, #tpu.memory_space<vmem>>, vector<8x128xf32>
    %1 = arith.mulf %0, %0 : vector<8x128xf32>
    %cst = arith.constant dense<0.000000e+00> : vector<8xf32>
    %2 = vector.multi_reduction <add>, %1, %cst [1] : vector<8x128xf32> to vector<8xf32>
    %3 = vector.shape_cast %2 : vector<8xf32> to vector<8x1xf32>
    %cst_1 = arith.constant 1.000000e-24 : f32
    %4 = vector.broadcast %cst_1 : f32 to vector<8x1xf32>
    %5 = arith.maximumf %3, %4 : vector<8x1xf32>
    %6 = math.rsqrt %5 : vector<8x1xf32>
    %7 = vector.broadcast %6 : vector<8x1xf32> to vector<8x128xf32>
    %8 = arith.mulf %0, %7 : vector<8x128xf32>
    %c0_2 = arith.constant 0 : index
    %c0_3 = arith.constant 0 : index
    %9 = vector.load %arg1[%c0_2, %c0_3] : memref<8x128xf32, #tpu.memory_space<vmem>>, vector<8x128xf32>
    %10 = arith.mulf %9, %9 : vector<8x128xf32>
    %cst_4 = arith.constant dense<0.000000e+00> : vector<8xf32>
    %11 = vector.multi_reduction <add>, %10, %cst_4 [1] : vector<8x128xf32> to vector<8xf32>
    %12 = vector.shape_cast %11 : vector<8xf32> to vector<8x1xf32>
    %cst_5 = arith.constant 1.000000e-24 : f32
    %13 = vector.broadcast %cst_5 : f32 to vector<8x1xf32>
    %14 = arith.maximumf %12, %13 : vector<8x1xf32>
    %15 = math.rsqrt %14 : vector<8x1xf32>
    %16 = vector.broadcast %15 : vector<8x1xf32> to vector<8x128xf32>
    %17 = arith.mulf %9, %16 : vector<8x128xf32>
    %c0_6 = arith.constant 0 : index
    %c0_7 = arith.constant 0 : index
    %18 = vector.load %arg2[%c0_6, %c0_7] : memref<8x128xf32, #tpu.memory_space<vmem>>, vector<8x128xf32>
    %19 = arith.mulf %18, %18 : vector<8x128xf32>
    %cst_8 = arith.constant dense<0.000000e+00> : vector<8xf32>
    %20 = vector.multi_reduction <add>, %19, %cst_8 [1] : vector<8x128xf32> to vector<8xf32>
    %21 = vector.shape_cast %20 : vector<8xf32> to vector<8x1xf32>
    %cst_9 = arith.constant 1.000000e-24 : f32
    %22 = vector.broadcast %cst_9 : f32 to vector<8x1xf32>
    %23 = arith.maximumf %21, %22 : vector<8x1xf32>
    %24 = math.rsqrt %23 : vector<8x1xf32>
    %25 = vector.broadcast %24 : vector<8x1xf32> to vector<8x128xf32>
    %26 = arith.mulf %18, %25 : vector<8x128xf32>
    %c0_10 = arith.constant 0 : index
    %c0_11 = arith.constant 0 : index
    %27 = vector.load %arg3[%c0_10, %c0_11] : memref<8x128xf32, #tpu.memory_space<vmem>>, vector<8x128xf32>
    %28 = arith.mulf %27, %27 : vector<8x128xf32>
    %cst_12 = arith.constant dense<0.000000e+00> : vector<8xf32>
    %29 = vector.multi_reduction <add>, %28, %cst_12 [1] : vector<8x128xf32> to vector<8xf32>
    %30 = vector.shape_cast %29 : vector<8xf32> to vector<8x1xf32>
    %cst_13 = arith.constant 1.000000e-24 : f32
    %31 = vector.broadcast %cst_13 : f32 to vector<8x1xf32>
    %32 = arith.maximumf %30, %31 : vector<8x1xf32>
    %33 = math.rsqrt %32 : vector<8x1xf32>
    %34 = vector.broadcast %33 : vector<8x1xf32> to vector<8x128xf32>
    %35 = arith.mulf %27, %34 : vector<8x128xf32>
    %c0_14 = arith.constant 0 : index
    %c0_15 = arith.constant 0 : index
    %36 = vector.load %arg4[%c0_14, %c0_15] : memref<8x128xf32, #tpu.memory_space<vmem>>, vector<8x128xf32>
    %37 = arith.mulf %36, %36 : vector<8x128xf32>
    %cst_16 = arith.constant dense<0.000000e+00> : vector<8xf32>
    %38 = vector.multi_reduction <add>, %37, %cst_16 [1] : vector<8x128xf32> to vector<8xf32>
    %39 = vector.shape_cast %38 : vector<8xf32> to vector<8x1xf32>
    %cst_17 = arith.constant 1.000000e-24 : f32
    %40 = vector.broadcast %cst_17 : f32 to vector<8x1xf32>
    %41 = arith.maximumf %39, %40 : vector<8x1xf32>
    %42 = math.rsqrt %41 : vector<8x1xf32>
    %43 = vector.broadcast %42 : vector<8x1xf32> to vector<8x128xf32>
    %44 = arith.mulf %36, %43 : vector<8x128xf32>
    %c0_18 = arith.constant 0 : index
    %c0_19 = arith.constant 0 : index
    %45 = vector.load %arg5[%c0_18, %c0_19] : memref<8x128xf32, #tpu.memory_space<vmem>>, vector<8x128xf32>
    %46 = arith.mulf %45, %45 : vector<8x128xf32>
    %cst_20 = arith.constant dense<0.000000e+00> : vector<8xf32>
    %47 = vector.multi_reduction <add>, %46, %cst_20 [1] : vector<8x128xf32> to vector<8xf32>
    %48 = vector.shape_cast %47 : vector<8xf32> to vector<8x1xf32>
    %cst_21 = arith.constant 1.000000e-24 : f32
    %49 = vector.broadcast %cst_21 : f32 to vector<8x1xf32>
    %50 = arith.maximumf %48, %49 : vector<8x1xf32>
    %51 = math.rsqrt %50 : vector<8x1xf32>
    %52 = vector.broadcast %51 : vector<8x1xf32> to vector<8x128xf32>
    %53 = arith.mulf %45, %52 : vector<8x128xf32>
    %54 = arith.truncf %8 : vector<8x128xf32> to vector<8x128xbf16>
    %55 = arith.truncf %35 : vector<8x128xf32> to vector<8x128xbf16>
    %cst_22 = arith.constant dense<0.000000e+00> : vector<8x8xf32>
    %56 = tpu.matmul %54, %54, %cst_22 {dimension_numbers = #tpu.dot_dimension_numbers<[1], [1], [0], [0], [0, 0, 1, 0], [], []>} : vector<8x128xbf16>, vector<8x128xbf16>, vector<8x8xf32> -> vector<8x8xf32>
    %cst_23 = arith.constant dense<0.000000e+00> : vector<8x8xf32>
    %57 = tpu.matmul %54, %55, %cst_23 {dimension_numbers = #tpu.dot_dimension_numbers<[1], [1], [0], [0], [0, 0, 1, 0], [], []>} : vector<8x128xbf16>, vector<8x128xbf16>, vector<8x8xf32> -> vector<8x8xf32>
    %cst_24 = arith.constant dense<0.000000e+00> : vector<8x8xf32>
    %58 = tpu.matmul %55, %55, %cst_24 {dimension_numbers = #tpu.dot_dimension_numbers<[1], [1], [0], [0], [0, 0, 1, 0], [], []>} : vector<8x128xbf16>, vector<8x128xbf16>, vector<8x8xf32> -> vector<8x8xf32>
    %cst_25 = arith.constant 2.000000e+00 : f32
    %59 = vector.broadcast %cst_25 : f32 to vector<8x8xf32>
    %60 = arith.mulf %56, %59 : vector<8x8xf32>
    %61 = math.exp %60 : vector<8x8xf32>
    %cst_26 = arith.constant 2.000000e+00 : f32
    %62 = vector.broadcast %cst_26 : f32 to vector<8x8xf32>
    %63 = arith.mulf %57, %62 : vector<8x8xf32>
    %64 = math.exp %63 : vector<8x8xf32>
    %cst_27 = arith.constant 2.000000e+00 : f32
    %65 = vector.broadcast %cst_27 : f32 to vector<8x8xf32>
    %66 = arith.mulf %58, %65 : vector<8x8xf32>
    %67 = math.exp %66 : vector<8x8xf32>
    %68 = arith.extf %54 : vector<8x128xbf16> to vector<8x128xf32>
    %69 = arith.extf %55 : vector<8x128xbf16> to vector<8x128xf32>
    %70 = arith.mulf %68, %68 : vector<8x128xf32>
    %cst_28 = arith.constant dense<0.000000e+00> : vector<8xf32>
    %71 = vector.multi_reduction <add>, %70, %cst_28 [1] : vector<8x128xf32> to vector<8xf32>
    %72 = vector.shape_cast %71 : vector<8xf32> to vector<8x1xf32>
    %cst_29 = arith.constant 2.000000e+00 : f32
    %73 = vector.broadcast %cst_29 : f32 to vector<8x1xf32>
    %74 = arith.mulf %72, %73 : vector<8x1xf32>
    %75 = math.exp %74 : vector<8x1xf32>
    %76 = arith.mulf %69, %69 : vector<8x128xf32>
    %cst_30 = arith.constant dense<0.000000e+00> : vector<8xf32>
    %77 = vector.multi_reduction <add>, %76, %cst_30 [1] : vector<8x128xf32> to vector<8xf32>
    %78 = vector.shape_cast %77 : vector<8xf32> to vector<8x1xf32>
    %cst_31 = arith.constant 2.000000e+00 : f32
    %79 = vector.broadcast %cst_31 : f32 to vector<8x1xf32>
    %80 = arith.mulf %78, %79 : vector<8x1xf32>
    %81 = math.exp %80 : vector<8x1xf32>
    %82 = tpu.transpose %64, [1, 0] : vector<8x8xf32> -> vector<8x8xf32>
    %cst_32 = arith.constant dense<0.000000e+00> : vector<8xf32>
    %83 = vector.multi_reduction <add>, %82, %cst_32 [1] : vector<8x8xf32> to vector<8xf32>
    %84 = vector.shape_cast %83 : vector<8xf32> to vector<8x1xf32>
    %cst_33 = arith.constant dense<0.000000e+00> : vector<8xf32>
    %85 = vector.multi_reduction <add>, %61, %cst_33 [1] : vector<8x8xf32> to vector<8xf32>
    %86 = vector.shape_cast %85 : vector<8xf32> to vector<8x1xf32>
    %cst_34 = arith.constant dense<0.000000e+00> : vector<8xf32>
    %87 = vector.multi_reduction <add>, %64, %cst_34 [1] : vector<8x8xf32> to vector<8xf32>
    %88 = vector.shape_cast %87 : vector<8xf32> to vector<8x1xf32>
    %89 = arith.addf %86, %88 : vector<8x1xf32>
    %90 = arith.subf %89, %75 : vector<8x1xf32>
    %cst_35 = arith.constant dense<0.000000e+00> : vector<8xf32>
    %91 = vector.multi_reduction <add>, %67, %cst_35 [1] : vector<8x8xf32> to vector<8xf32>
    %92 = vector.shape_cast %91 : vector<8xf32> to vector<8x1xf32>
    %93 = arith.addf %92, %84 : vector<8x1xf32>
    %94 = arith.subf %93, %81 : vector<8x1xf32>
    %95 = arith.mulf %8, %35 : vector<8x128xf32>
    %cst_36 = arith.constant dense<0.000000e+00> : vector<8xf32>
    %96 = vector.multi_reduction <add>, %95, %cst_36 [1] : vector<8x128xf32> to vector<8xf32>
    %97 = vector.shape_cast %96 : vector<8xf32> to vector<8x1xf32>
    %98 = arith.mulf %90, %94 : vector<8x1xf32>
    %99 = math.log %98 : vector<8x1xf32>
    %cst_37 = arith.constant 2.000000e+00 : f32
    %100 = vector.broadcast %cst_37 : f32 to vector<8x1xf32>
    %101 = arith.mulf %100, %97 : vector<8x1xf32>
    %cst_38 = arith.constant 2.000000e+00 : f32
    %102 = vector.broadcast %cst_38 : f32 to vector<8x1xf32>
    %103 = arith.mulf %101, %102 : vector<8x1xf32>
    %104 = arith.subf %99, %103 : vector<8x1xf32>
    %cst_39 = arith.constant dense<0.000000e+00> : vector<1xf32>
    %105 = vector.multi_reduction <add>, %104, %cst_39 [0] : vector<8x1xf32> to vector<1xf32>
    %106 = vector.shape_cast %105 : vector<1xf32> to vector<1x1xf32>
    %107 = arith.truncf %17 : vector<8x128xf32> to vector<8x128xbf16>
    %108 = arith.truncf %44 : vector<8x128xf32> to vector<8x128xbf16>
    %cst_40 = arith.constant dense<0.000000e+00> : vector<8x8xf32>
    %109 = tpu.matmul %107, %107, %cst_40 {dimension_numbers = #tpu.dot_dimension_numbers<[1], [1], [0], [0], [0, 0, 1, 0], [], []>} : vector<8x128xbf16>, vector<8x128xbf16>, vector<8x8xf32> -> vector<8x8xf32>
    %cst_41 = arith.constant dense<0.000000e+00> : vector<8x8xf32>
    %110 = tpu.matmul %107, %108, %cst_41 {dimension_numbers = #tpu.dot_dimension_numbers<[1], [1], [0], [0], [0, 0, 1, 0], [], []>} : vector<8x128xbf16>, vector<8x128xbf16>, vector<8x8xf32> -> vector<8x8xf32>
    %cst_42 = arith.constant dense<0.000000e+00> : vector<8x8xf32>
    %111 = tpu.matmul %108, %108, %cst_42 {dimension_numbers = #tpu.dot_dimension_numbers<[1], [1], [0], [0], [0, 0, 1, 0], [], []>} : vector<8x128xbf16>, vector<8x128xbf16>, vector<8x8xf32> -> vector<8x8xf32>
    %cst_43 = arith.constant 2.000000e+00 : f32
    %112 = vector.broadcast %cst_43 : f32 to vector<8x8xf32>
    %113 = arith.mulf %109, %112 : vector<8x8xf32>
    %114 = math.exp %113 : vector<8x8xf32>
    %cst_44 = arith.constant 2.000000e+00 : f32
    %115 = vector.broadcast %cst_44 : f32 to vector<8x8xf32>
    %116 = arith.mulf %110, %115 : vector<8x8xf32>
    %117 = math.exp %116 : vector<8x8xf32>
    %cst_45 = arith.constant 2.000000e+00 : f32
    %118 = vector.broadcast %cst_45 : f32 to vector<8x8xf32>
    %119 = arith.mulf %111, %118 : vector<8x8xf32>
    %120 = math.exp %119 : vector<8x8xf32>
    %121 = arith.extf %107 : vector<8x128xbf16> to vector<8x128xf32>
    %122 = arith.extf %108 : vector<8x128xbf16> to vector<8x128xf32>
    %123 = arith.mulf %121, %121 : vector<8x128xf32>
    %cst_46 = arith.constant dense<0.000000e+00> : vector<8xf32>
    %124 = vector.multi_reduction <add>, %123, %cst_46 [1] : vector<8x128xf32> to vector<8xf32>
    %125 = vector.shape_cast %124 : vector<8xf32> to vector<8x1xf32>
    %cst_47 = arith.constant 2.000000e+00 : f32
    %126 = vector.broadcast %cst_47 : f32 to vector<8x1xf32>
    %127 = arith.mulf %125, %126 : vector<8x1xf32>
    %128 = math.exp %127 : vector<8x1xf32>
    %129 = arith.mulf %122, %122 : vector<8x128xf32>
    %cst_48 = arith.constant dense<0.000000e+00> : vector<8xf32>
    %130 = vector.multi_reduction <add>, %129, %cst_48 [1] : vector<8x128xf32> to vector<8xf32>
    %131 = vector.shape_cast %130 : vector<8xf32> to vector<8x1xf32>
    %cst_49 = arith.constant 2.000000e+00 : f32
    %132 = vector.broadcast %cst_49 : f32 to vector<8x1xf32>
    %133 = arith.mulf %131, %132 : vector<8x1xf32>
    %134 = math.exp %133 : vector<8x1xf32>
    %135 = tpu.transpose %117, [1, 0] : vector<8x8xf32> -> vector<8x8xf32>
    %cst_50 = arith.constant dense<0.000000e+00> : vector<8xf32>
    %136 = vector.multi_reduction <add>, %135, %cst_50 [1] : vector<8x8xf32> to vector<8xf32>
    %137 = vector.shape_cast %136 : vector<8xf32> to vector<8x1xf32>
    %cst_51 = arith.constant dense<0.000000e+00> : vector<8xf32>
    %138 = vector.multi_reduction <add>, %114, %cst_51 [1] : vector<8x8xf32> to vector<8xf32>
    %139 = vector.shape_cast %138 : vector<8xf32> to vector<8x1xf32>
    %cst_52 = arith.constant dense<0.000000e+00> : vector<8xf32>
    %140 = vector.multi_reduction <add>, %117, %cst_52 [1] : vector<8x8xf32> to vector<8xf32>
    %141 = vector.shape_cast %140 : vector<8xf32> to vector<8x1xf32>
    %142 = arith.addf %139, %141 : vector<8x1xf32>
    %143 = arith.subf %142, %128 : vector<8x1xf32>
    %cst_53 = arith.constant dense<0.000000e+00> : vector<8xf32>
    %144 = vector.multi_reduction <add>, %120, %cst_53 [1] : vector<8x8xf32> to vector<8xf32>
    %145 = vector.shape_cast %144 : vector<8xf32> to vector<8x1xf32>
    %146 = arith.addf %145, %137 : vector<8x1xf32>
    %147 = arith.subf %146, %134 : vector<8x1xf32>
    %148 = arith.mulf %17, %44 : vector<8x128xf32>
    %cst_54 = arith.constant dense<0.000000e+00> : vector<8xf32>
    %149 = vector.multi_reduction <add>, %148, %cst_54 [1] : vector<8x128xf32> to vector<8xf32>
    %150 = vector.shape_cast %149 : vector<8xf32> to vector<8x1xf32>
    %151 = arith.mulf %143, %147 : vector<8x1xf32>
    %152 = math.log %151 : vector<8x1xf32>
    %cst_55 = arith.constant 2.000000e+00 : f32
    %153 = vector.broadcast %cst_55 : f32 to vector<8x1xf32>
    %154 = arith.mulf %153, %150 : vector<8x1xf32>
    %cst_56 = arith.constant 2.000000e+00 : f32
    %155 = vector.broadcast %cst_56 : f32 to vector<8x1xf32>
    %156 = arith.mulf %154, %155 : vector<8x1xf32>
    %157 = arith.subf %152, %156 : vector<8x1xf32>
    %cst_57 = arith.constant dense<0.000000e+00> : vector<1xf32>
    %158 = vector.multi_reduction <add>, %157, %cst_57 [0] : vector<8x1xf32> to vector<1xf32>
    %159 = vector.shape_cast %158 : vector<1xf32> to vector<1x1xf32>
    %160 = arith.addf %106, %159 : vector<1x1xf32>
    %161 = arith.truncf %26 : vector<8x128xf32> to vector<8x128xbf16>
    %162 = arith.truncf %53 : vector<8x128xf32> to vector<8x128xbf16>
    %cst_58 = arith.constant dense<0.000000e+00> : vector<8x8xf32>
    %163 = tpu.matmul %161, %161, %cst_58 {dimension_numbers = #tpu.dot_dimension_numbers<[1], [1], [0], [0], [0, 0, 1, 0], [], []>} : vector<8x128xbf16>, vector<8x128xbf16>, vector<8x8xf32> -> vector<8x8xf32>
    %cst_59 = arith.constant dense<0.000000e+00> : vector<8x8xf32>
    %164 = tpu.matmul %161, %162, %cst_59 {dimension_numbers = #tpu.dot_dimension_numbers<[1], [1], [0], [0], [0, 0, 1, 0], [], []>} : vector<8x128xbf16>, vector<8x128xbf16>, vector<8x8xf32> -> vector<8x8xf32>
    %cst_60 = arith.constant dense<0.000000e+00> : vector<8x8xf32>
    %165 = tpu.matmul %162, %162, %cst_60 {dimension_numbers = #tpu.dot_dimension_numbers<[1], [1], [0], [0], [0, 0, 1, 0], [], []>} : vector<8x128xbf16>, vector<8x128xbf16>, vector<8x8xf32> -> vector<8x8xf32>
    %cst_61 = arith.constant 2.000000e+00 : f32
    %166 = vector.broadcast %cst_61 : f32 to vector<8x8xf32>
    %167 = arith.mulf %163, %166 : vector<8x8xf32>
    %168 = math.exp %167 : vector<8x8xf32>
    %cst_62 = arith.constant 2.000000e+00 : f32
    %169 = vector.broadcast %cst_62 : f32 to vector<8x8xf32>
    %170 = arith.mulf %164, %169 : vector<8x8xf32>
    %171 = math.exp %170 : vector<8x8xf32>
    %cst_63 = arith.constant 2.000000e+00 : f32
    %172 = vector.broadcast %cst_63 : f32 to vector<8x8xf32>
    %173 = arith.mulf %165, %172 : vector<8x8xf32>
    %174 = math.exp %173 : vector<8x8xf32>
    %175 = arith.extf %161 : vector<8x128xbf16> to vector<8x128xf32>
    %176 = arith.extf %162 : vector<8x128xbf16> to vector<8x128xf32>
    %177 = arith.mulf %175, %175 : vector<8x128xf32>
    %cst_64 = arith.constant dense<0.000000e+00> : vector<8xf32>
    %178 = vector.multi_reduction <add>, %177, %cst_64 [1] : vector<8x128xf32> to vector<8xf32>
    %179 = vector.shape_cast %178 : vector<8xf32> to vector<8x1xf32>
    %cst_65 = arith.constant 2.000000e+00 : f32
    %180 = vector.broadcast %cst_65 : f32 to vector<8x1xf32>
    %181 = arith.mulf %179, %180 : vector<8x1xf32>
    %182 = math.exp %181 : vector<8x1xf32>
    %183 = arith.mulf %176, %176 : vector<8x128xf32>
    %cst_66 = arith.constant dense<0.000000e+00> : vector<8xf32>
    %184 = vector.multi_reduction <add>, %183, %cst_66 [1] : vector<8x128xf32> to vector<8xf32>
    %185 = vector.shape_cast %184 : vector<8xf32> to vector<8x1xf32>
    %cst_67 = arith.constant 2.000000e+00 : f32
    %186 = vector.broadcast %cst_67 : f32 to vector<8x1xf32>
    %187 = arith.mulf %185, %186 : vector<8x1xf32>
    %188 = math.exp %187 : vector<8x1xf32>
    %189 = tpu.transpose %171, [1, 0] : vector<8x8xf32> -> vector<8x8xf32>
    %cst_68 = arith.constant dense<0.000000e+00> : vector<8xf32>
    %190 = vector.multi_reduction <add>, %189, %cst_68 [1] : vector<8x8xf32> to vector<8xf32>
    %191 = vector.shape_cast %190 : vector<8xf32> to vector<8x1xf32>
    %cst_69 = arith.constant dense<0.000000e+00> : vector<8xf32>
    %192 = vector.multi_reduction <add>, %168, %cst_69 [1] : vector<8x8xf32> to vector<8xf32>
    %193 = vector.shape_cast %192 : vector<8xf32> to vector<8x1xf32>
    %cst_70 = arith.constant dense<0.000000e+00> : vector<8xf32>
    %194 = vector.multi_reduction <add>, %171, %cst_70 [1] : vector<8x8xf32> to vector<8xf32>
    %195 = vector.shape_cast %194 : vector<8xf32> to vector<8x1xf32>
    %196 = arith.addf %193, %195 : vector<8x1xf32>
    %197 = arith.subf %196, %182 : vector<8x1xf32>
    %cst_71 = arith.constant dense<0.000000e+00> : vector<8xf32>
    %198 = vector.multi_reduction <add>, %174, %cst_71 [1] : vector<8x8xf32> to vector<8xf32>
    %199 = vector.shape_cast %198 : vector<8xf32> to vector<8x1xf32>
    %200 = arith.addf %199, %191 : vector<8x1xf32>
    %201 = arith.subf %200, %188 : vector<8x1xf32>
    %202 = arith.mulf %26, %53 : vector<8x128xf32>
    %cst_72 = arith.constant dense<0.000000e+00> : vector<8xf32>
    %203 = vector.multi_reduction <add>, %202, %cst_72 [1] : vector<8x128xf32> to vector<8xf32>
    %204 = vector.shape_cast %203 : vector<8xf32> to vector<8x1xf32>
    %205 = arith.mulf %197, %201 : vector<8x1xf32>
    %206 = math.log %205 : vector<8x1xf32>
    %cst_73 = arith.constant 2.000000e+00 : f32
    %207 = vector.broadcast %cst_73 : f32 to vector<8x1xf32>
    %208 = arith.mulf %207, %204 : vector<8x1xf32>
    %cst_74 = arith.constant 2.000000e+00 : f32
    %209 = vector.broadcast %cst_74 : f32 to vector<8x1xf32>
    %210 = arith.mulf %208, %209 : vector<8x1xf32>
    %211 = arith.subf %206, %210 : vector<8x1xf32>
    %cst_75 = arith.constant dense<0.000000e+00> : vector<1xf32>
    %212 = vector.multi_reduction <add>, %211, %cst_75 [0] : vector<8x1xf32> to vector<1xf32>
    %213 = vector.shape_cast %212 : vector<1xf32> to vector<1x1xf32>
    %214 = arith.addf %160, %213 : vector<1x1xf32>
    %cst_76 = arith.constant 1.600000e+01 : f32
    %215 = vector.broadcast %cst_76 : f32 to vector<1x1xf32>
    %216 = arith.divf %214, %215 : vector<1x1xf32>
    %217 = arith.mulf %8, %26 : vector<8x128xf32>
    %cst_77 = arith.constant dense<0.000000e+00> : vector<8xf32>
    %218 = vector.multi_reduction <add>, %217, %cst_77 [1] : vector<8x128xf32> to vector<8xf32>
    %219 = vector.shape_cast %218 : vector<8xf32> to vector<8x1xf32>
    %cst_78 = arith.constant 2.000000e+00 : f32
    %220 = vector.broadcast %cst_78 : f32 to vector<8x1xf32>
    %221 = arith.mulf %219, %220 : vector<8x1xf32>
    %222 = math.exp %221 : vector<8x1xf32>
    %223 = arith.mulf %8, %35 : vector<8x128xf32>
    %cst_79 = arith.constant dense<0.000000e+00> : vector<8xf32>
    %224 = vector.multi_reduction <add>, %223, %cst_79 [1] : vector<8x128xf32> to vector<8xf32>
    %225 = vector.shape_cast %224 : vector<8xf32> to vector<8x1xf32>
    %cst_80 = arith.constant 2.000000e+00 : f32
    %226 = vector.broadcast %cst_80 : f32 to vector<8x1xf32>
    %227 = arith.mulf %225, %226 : vector<8x1xf32>
    %228 = math.exp %227 : vector<8x1xf32>
    %229 = arith.mulf %8, %53 : vector<8x128xf32>
    %cst_81 = arith.constant dense<0.000000e+00> : vector<8xf32>
    %230 = vector.multi_reduction <add>, %229, %cst_81 [1] : vector<8x128xf32> to vector<8xf32>
    %231 = vector.shape_cast %230 : vector<8xf32> to vector<8x1xf32>
    %cst_82 = arith.constant 2.000000e+00 : f32
    %232 = vector.broadcast %cst_82 : f32 to vector<8x1xf32>
    %233 = arith.mulf %231, %232 : vector<8x1xf32>
    %234 = math.exp %233 : vector<8x1xf32>
    %235 = arith.mulf %26, %35 : vector<8x128xf32>
    %cst_83 = arith.constant dense<0.000000e+00> : vector<8xf32>
    %236 = vector.multi_reduction <add>, %235, %cst_83 [1] : vector<8x128xf32> to vector<8xf32>
    %237 = vector.shape_cast %236 : vector<8xf32> to vector<8x1xf32>
    %cst_84 = arith.constant 2.000000e+00 : f32
    %238 = vector.broadcast %cst_84 : f32 to vector<8x1xf32>
    %239 = arith.mulf %237, %238 : vector<8x1xf32>
    %240 = math.exp %239 : vector<8x1xf32>
    %241 = arith.mulf %26, %53 : vector<8x128xf32>
    %cst_85 = arith.constant dense<0.000000e+00> : vector<8xf32>
    %242 = vector.multi_reduction <add>, %241, %cst_85 [1] : vector<8x128xf32> to vector<8xf32>
    %243 = vector.shape_cast %242 : vector<8xf32> to vector<8x1xf32>
    %cst_86 = arith.constant 2.000000e+00 : f32
    %244 = vector.broadcast %cst_86 : f32 to vector<8x1xf32>
    %245 = arith.mulf %243, %244 : vector<8x1xf32>
    %246 = math.exp %245 : vector<8x1xf32>
    %247 = arith.mulf %35, %53 : vector<8x128xf32>
    %cst_87 = arith.constant dense<0.000000e+00> : vector<8xf32>
    %248 = vector.multi_reduction <add>, %247, %cst_87 [1] : vector<8x128xf32> to vector<8xf32>
    %249 = vector.shape_cast %248 : vector<8xf32> to vector<8x1xf32>
    %cst_88 = arith.constant 2.000000e+00 : f32
    %250 = vector.broadcast %cst_88 : f32 to vector<8x1xf32>
    %251 = arith.mulf %249, %250 : vector<8x1xf32>
    %252 = math.exp %251 : vector<8x1xf32>
    %cst_89 = arith.constant 0.000000e+00 : f32
    %253 = vector.broadcast %cst_89 : f32 to vector<1x1xf32>
    %254 = arith.addf %222, %228 : vector<8x1xf32>
    %255 = arith.addf %254, %234 : vector<8x1xf32>
    %256 = math.log %255 : vector<8x1xf32>
    %cst_90 = arith.constant 2.000000e+00 : f32
    %257 = vector.broadcast %cst_90 : f32 to vector<8x1xf32>
    %258 = arith.mulf %225, %257 : vector<8x1xf32>
    %259 = arith.subf %256, %258 : vector<8x1xf32>
    %cst_91 = arith.constant dense<0.000000e+00> : vector<1xf32>
    %260 = vector.multi_reduction <add>, %259, %cst_91 [0] : vector<8x1xf32> to vector<1xf32>
    %261 = vector.shape_cast %260 : vector<1xf32> to vector<1x1xf32>
    %262 = arith.addf %253, %261 : vector<1x1xf32>
    %263 = arith.addf %222, %240 : vector<8x1xf32>
    %264 = arith.addf %263, %246 : vector<8x1xf32>
    %265 = math.log %264 : vector<8x1xf32>
    %cst_92 = arith.constant 2.000000e+00 : f32
    %266 = vector.broadcast %cst_92 : f32 to vector<8x1xf32>
    %267 = arith.mulf %243, %266 : vector<8x1xf32>
    %268 = arith.subf %265, %267 : vector<8x1xf32>
    %cst_93 = arith.constant dense<0.000000e+00> : vector<1xf32>
    %269 = vector.multi_reduction <add>, %268, %cst_93 [0] : vector<8x1xf32> to vector<1xf32>
    %270 = vector.shape_cast %269 : vector<1xf32> to vector<1x1xf32>
    %271 = arith.addf %262, %270 : vector<1x1xf32>
    %272 = arith.addf %228, %240 : vector<8x1xf32>
    %273 = arith.addf %272, %252 : vector<8x1xf32>
    %274 = math.log %273 : vector<8x1xf32>
    %cst_94 = arith.constant 2.000000e+00 : f32
    %275 = vector.broadcast %cst_94 : f32 to vector<8x1xf32>
    %276 = arith.mulf %225, %275 : vector<8x1xf32>
    %277 = arith.subf %274, %276 : vector<8x1xf32>
    %cst_95 = arith.constant dense<0.000000e+00> : vector<1xf32>
    %278 = vector.multi_reduction <add>, %277, %cst_95 [0] : vector<8x1xf32> to vector<1xf32>
    %279 = vector.shape_cast %278 : vector<1xf32> to vector<1x1xf32>
    %280 = arith.addf %271, %279 : vector<1x1xf32>
    %281 = arith.addf %234, %246 : vector<8x1xf32>
    %282 = arith.addf %281, %252 : vector<8x1xf32>
    %283 = math.log %282 : vector<8x1xf32>
    %cst_96 = arith.constant 2.000000e+00 : f32
    %284 = vector.broadcast %cst_96 : f32 to vector<8x1xf32>
    %285 = arith.mulf %243, %284 : vector<8x1xf32>
    %286 = arith.subf %283, %285 : vector<8x1xf32>
    %cst_97 = arith.constant dense<0.000000e+00> : vector<1xf32>
    %287 = vector.multi_reduction <add>, %286, %cst_97 [0] : vector<8x1xf32> to vector<1xf32>
    %288 = vector.shape_cast %287 : vector<1xf32> to vector<1x1xf32>
    %289 = arith.addf %280, %288 : vector<1x1xf32>
    %cst_98 = arith.constant 3.200000e+01 : f32
    %290 = vector.broadcast %cst_98 : f32 to vector<1x1xf32>
    %291 = arith.divf %289, %290 : vector<1x1xf32>
    %292 = arith.addf %216, %291 : vector<1x1xf32>
    %c0_99 = arith.constant 0 : index
    %c0_100 = arith.constant 0 : index
    %293 = vector.load %arg7[%c0_99, %c0_100] : memref<1x1xf32, #tpu.memory_space<vmem>>, vector<1x1xf32>
    tpu.vector_store %arg7[%c0_99, %c0_100], %292 {strides = array<i32>} : memref<1x1xf32, #tpu.memory_space<vmem>>, vector<1x1xf32>,
    %c0_101 = arith.constant 0 : index
    %c0_102 = arith.constant 0 : index
    %294 = vector.load %arg7[%c0_101, %c0_102] : memref<1x1xf32, #tpu.memory_space<vmem>>, vector<1x1xf32>
    %295 = vector.extract %294[0, 0] : f32 from vector<1x1xf32>
    %c0_103 = arith.constant 0 : index
    %c0_104 = arith.constant 0 : index
    %296 = memref.load %arg6[%c0_103, %c0_104] : memref<1x1xf32, #tpu.memory_space<smem>>
    memref.store %295, %arg6[%c0_103, %c0_104] : memref<1x1xf32, #tpu.memory_space<smem>>
    return
  }
}

</mosaic_0001>

<bundles_post_ra>
// kernel: tpu_custom_call.1
= control target key start
LH: loop header
LB: loop body
LE: loop exit
PB: predicated region body
PF: predicated region fallthrough
CT: control target
= control target key end

     0   :  { %11 = vsyncpa [#allocation4], 0  ;;  %s1143_s0 = inlined_call_operand.hbm [shape: f32[8,128], index: 0, kind: input, shape index: {}]   ;;  %s1144_s1 = inlined_call_operand.hbm [shape: f32[8,128], index: 1, kind: input, shape index: {}]   ;;  %s1145_s2 = inlined_call_operand.hbm [shape: f32[8,128], index: 2, kind: input, shape index: {}]   ;;  %s1146_s3 = inlined_call_operand.hbm [shape: f32[8,128], index: 3, kind: input, shape index: {}]   ;;  %s1147_s4 = inlined_call_operand.hbm [shape: f32[8,128], index: 4, kind: input, shape index: {}]   ;;  %s1148_s5 = inlined_call_operand.hbm [shape: f32[8,128], index: 5, kind: input, shape index: {}]   ;;  %s1149_s6 = inlined_call_operand.hbm [shape: f32[1,1], index: 6, kind: output, shape index: {}]  }
   0x1   :  { %12 = vsyncpa [#allocation7], 0 }
   0x2   :  { %13 = vsyncpa [#allocation10], 0 }
   0x3   :  { %14 = vsyncpa [#allocation13], 0  ;;  %s32_s23 = sshll.u32 %s1144_s1, 4  ;;  %s33_s23 = int_to_ptr.hbm [resolvable:$true] %s32_s23 }
   0x4   :  { %15 = vsyncpa [#allocation5], 0  ;;  %s955_s24 = smov [#allocation6]   ;;  %s54_s28 = sshll.u32 %s1146_s3, 4  ;;  %s55_s28 = int_to_ptr.hbm [resolvable:$true] %s54_s28 }
   0x5   :  { %s34_s25 = sshll.u32 %s955_s24, 4  ;;  %s956_s29 = smov [#allocation9]   ;;  %s35_s25 = int_to_ptr.vmem [resolvable:$true] %s34_s25 }
   0x6   :  { %37 = dma.hbm_to_vmem [thread:$0]  %s33_s23, 128, %s35_s25, [#allocation7]  }
   0x7   :  { %s56_s30 = sshll.u32 %s956_s29, 4  ;;  %s21_s9 = sshll.u32 %s1143_s0, 4  ;;  %s57_s30 = int_to_ptr.vmem [resolvable:$true] %s56_s30  ;;  %s22_s9 = int_to_ptr.hbm [resolvable:$true] %s21_s9 }
   0x8   :  { %59 = dma.hbm_to_vmem [thread:$0]  %s55_s28, 128, %s57_s30, [#allocation10]  }
   0x9   :  { %s43_s11 = sshll.u32 %s1145_s2, 4  ;;  %s957_s12 = smov [#allocation3]   ;;  %s44_s11 = int_to_ptr.hbm [resolvable:$true] %s43_s11 }
   0xa   :  { %s23_s13 = sshll.u32 %s957_s12, 4  ;;  %s958_s3 = smov [#allocation8]   ;;  %s24_s13 = int_to_ptr.vmem [resolvable:$true] %s23_s13 }
   0xb   :  { %26 = dma.hbm_to_vmem [thread:$0]  %s22_s9, 128, %s24_s13, [#allocation4]  }
   0xc   :  { %s45_s14 = sshll.u32 %s958_s3, 4  ;;  %s65_s17 = sshll.u32 %s1147_s4, 4  ;;  %s46_s14 = int_to_ptr.vmem [resolvable:$true] %s45_s14  ;;  %s66_s17 = int_to_ptr.hbm [resolvable:$true] %s65_s17 }
   0xd   :  { %48 = dma.hbm_to_vmem [thread:$0]  %s44_s11, 128, %s46_s14, [#allocation7]  }
   0xe   :  { %s76_s19 = sshll.u32 %s1148_s5, 4  ;;  %s959_s20 = smov [#allocation11]   ;;  %s77_s19 = int_to_ptr.hbm [resolvable:$true] %s76_s19 }
   0xf   :  { %s67_s2 = sshll.u32 %s959_s20, 4  ;;  %s960_s21 = smov [#allocation12]   ;;  %s68_s2 = int_to_ptr.vmem [resolvable:$true] %s67_s2 }
  0x10   :  { %70 = dma.hbm_to_vmem [thread:$0]  %s66_s17, 128, %s68_s2, [#allocation10]  }
  0x11   :  { %s78_s22 = sshll.u32 %s960_s21, 4  ;;  %s79_s22 = int_to_ptr.vmem [resolvable:$true] %s78_s22 }
  0x12   :  { %81 = dma.hbm_to_vmem [thread:$0]  %s77_s19, 128, %s79_s22, [#allocation13]  }
  0x13   :  { %945 = dma.done.wait [#allocation4], 128  }
  0x14   :  { %946 = vsyncadd [#allocation4], 4294967168 }
  0x15   :  { %947 = dma.done.wait [#allocation7], 256  }
  0x16   :  { %948 = vsyncadd [#allocation7], 4294967040 }
  0x17   :  { %949 = dma.done.wait [#allocation10], 256  }
  0x18   :  { %950 = vsyncadd [#allocation10], 4294967040 }
  0x19   :  { %951 = dma.done.wait [#allocation13], 128  }
  0x1a   :  { %952 = vsyncadd [#allocation13], 4294967168  ;;  %v1017_v0 = vld [vmem:[#allocation11] sm:$0xff]  ;;  %v1019_v1 = vld [vmem:[#allocation9] sm:$0xff]  ;;  %s691_s23 = sshll.u32 %s1149_s6, 4  ;;  %s963_s25 = smov [#allocation14]   ;;  %s692_s23 = int_to_ptr.hbm [resolvable:$true] %s691_s23 }
  0x1b   :  { %v1021_v2 = vld [vmem:[#allocation6] sm:$0xff]  ;;  %v172_v3 = vmul.f32 %v1017_v0, %v1017_v0  ;;  %v156_v4 = vmul.f32 %v1019_v1, %v1019_v1  ;;  %v1031_v7 = vld [vmem:[#allocation8] sm:$0xff]  ;;  %v1033_v8 = vld [vmem:[#allocation3] sm:$0xff] }
  0x1c   :  { %v124_v5 = vmul.f32 %v1021_v2, %v1021_v2  ;;  %v1029_v6 = vld [vmem:[#allocation12] sm:$0xff]  ;;  %v140_v10 = vmul.f32 %v1031_v7, %v1031_v7  ;;  %v108_v11 = vmul.f32 %v1033_v8, %v1033_v8 }
  0x1d   :  { %173 = vadd.xlane.f32.xlu2 %v172_v3  ;;  %157 = vadd.xlane.f32.xlu1 %v156_v4  ;;  %v188_v9 = vmul.f32 %v1029_v6, %v1029_v6 }
  0x1e   :  { %125 = vadd.xlane.f32.xlu0 %v124_v5 }
  0x25   :  { %189 = vadd.xlane.f32.xlu1 %v188_v9  ;;  %141 = vadd.xlane.f32.xlu2 %v140_v10 }
  0x26   :  { %109 = vadd.xlane.f32.xlu0 %v108_v11 }
  0x90   :  { %v174_v12 = vpop.xlane.xlu2 %173  ;;  %v158_v13 = vpop.xlane.xlu1 %157 }
  0x91   :  { %v175_v14 = vmax.f32 %v174_v12, 1e-24  ;;  %v159_v15 = vmax.f32 %v158_v13, 1e-24  ;;  %v126_v16 = vpop.xlane.xlu0 %125 }
  0x92   :  { %v127_v17 = vmax.f32 %v126_v16, 1e-24 }
  0x93   :  { %717 = vrsqrt.f32 %v175_v14  ;;  %vm182_vm0 = vweird.f32 %v175_v14  ;;  %vm166_vm3 = vweird.f32 %v159_v15 }
  0x94   :  { %719 = vrsqrt.f32 %v159_v15  ;;  %vm134_vm6 = vweird.f32 %v127_v17 }
  0x95   :  { %721 = vrsqrt.f32 %v127_v17 }
  0x98   :  { %v190_v18 = vpop.xlane.xlu1 %189  ;;  %v142_v19 = vpop.xlane.xlu2 %141 }
  0x99   :  { %v718_v20 = vpop.eup %717  ;;  %v1041_v21 = vmax.f32 %v190_v18, 1e-24  ;;  %v143_v22 = vmax.f32 %v142_v19, 1e-24  ;;  %v110_v23 = vpop.xlane.xlu0 %109 }
  0x9a   :  { %v720_v24 = vpop.eup %719  ;;  %v177_v25 = vmul.f32 %v718_v20, %v175_v14  ;;  %v1043_v26 = vmax.f32 %v110_v23, 1e-24  ;;  %vm183_vm1 = vweird.f32 %v718_v20 }
  0x9b   :  { %v722_v27 = vpop.eup %721  ;;  %v161_v28 = vmul.f32 %v720_v24, %v159_v15  ;;  %723 = vrsqrt.f32 %v1041_v21  ;;  %vm1049_vm2 = vmor %vm182_vm0, %vm183_vm1  ;;  %vm167_vm4 = vweird.f32 %v720_v24  ;;  %vm198_vm7 = vweird.f32 %v1041_v21 }
  0x9c   :  { %v178_v29 = vmul.f32 %v718_v20, %v177_v25  ;;  %v129_v30 = vmul.f32 %v722_v27, %v127_v17  ;;  %725 = vrsqrt.f32 %v143_v22  ;;  %vm135_vm5 = vweird.f32 %v722_v27  ;;  %vm168_vm8 = vmor %vm166_vm3, %vm167_vm4 }
  0x9d   :  { %v162_v31 = vmul.f32 %v720_v24, %v161_v28  ;;  %727 = vrsqrt.f32 %v1043_v26  ;;  %vm136_vm9 = vmor %vm134_vm6, %vm135_vm5  ;;  %vm150_vm10 = vweird.f32 %v143_v22  ;;  %vm118_vm0 = vweird.f32 %v1043_v26 }
  0x9e   :  { %v179_v32 = vmul.f32 0.5, %v178_v29  ;;  %v130_v33 = vmul.f32 %v722_v27, %v129_v30  ;;  %vm680_vm5 = vcmask 0  }
  0x9f   :  { %v163_v34 = vmul.f32 0.5, %v162_v31 }
  0xa0   :  { %v180_v35 = vsub.f32 1.5, %v179_v32  ;;  %v131_v36 = vmul.f32 0.5, %v130_v33 }
  0xa1   :  { %v1047_v37 = vpop.eup %723  ;;  %v164_v39 = vsub.f32 1.5, %v163_v34 }
  0xa2   :  { %v726_v40 = vpop.eup %725  ;;  %v181_v41 = vmul.f32 %v718_v20, %v180_v35  ;;  %v132_v42 = vsub.f32 1.5, %v131_v36  ;;  %v193_v43 = vmul.f32 %v1047_v37, %v1041_v21  ;;  %vm199_vm12 = vweird.f32 %v1047_v37 }
  0xa3   :  { %v728_v44 = vpop.eup %727  ;;  %v165_v45 = vmul.f32 %v720_v24, %v164_v39  ;;  %v145_v46 = vmul.f32 %v726_v40, %v143_v22  ;;  %vm151_vm11 = vweird.f32 %v726_v40  ;;  %vm1080_vm15 = vmor %vm198_vm7, %vm199_vm12 }
  0xa4   :  { %v185_v47 = vsel %vm1049_vm2, %v718_v20, %v181_v41  ;;  %v133_v48 = vmul.f32 %v722_v27, %v132_v42  ;;  %v194_v49 = vmul.f32 %v1047_v37, %v193_v43  ;;  %v113_v50 = vmul.f32 %v728_v44, %v1043_v26  ;;  %vm1074_vm13 = vmor %vm150_vm10, %vm151_vm11 }
  0xa5   :  { %v186_v51 = vmul.f32 %v185_v47, %v1017_v0  ;;  %v169_v52 = vsel %vm168_vm8, %v720_v24, %v165_v45  ;;  %v146_v53 = vmul.f32 %v726_v40, %v145_v46  ;;  %vm119_vm14 = vweird.f32 %v728_v44 }
  0xa6   :  { %v1062_v54 = vmul.f32 %v169_v52, %v1019_v1  ;;  %v137_v55 = vsel %vm136_vm9, %v722_v27, %v133_v48  ;;  %v195_v56 = vmul.f32 0.5, %v194_v49  ;;  %v114_v57 = vmul.f32 %v728_v44, %v113_v50  ;;  %vm120_vm1 = vmor %vm118_vm0, %vm119_vm14 }
  0xa7   :  { %v138_v58 = vmul.f32 %v137_v55, %v1021_v2  ;;  %v147_v59 = vmul.f32 0.5, %v146_v53  ;;  %v1065_v60 = vpack.c.bf16 %v186_v51, %v186_v51  ;;  %vm299_vm2 = vcmask 64512  }
  0xa8   :  { %v196_v61 = vsub.f32 1.5, %v195_v56  ;;  %v115_v62 = vmul.f32 0.5, %v114_v57  ;;  %v204_v63 = vpack.c.bf16 %v1062_v54, %v1062_v54 }
  0xa9   :  { %v148_v0 = vsub.f32 1.5, %v147_v59  ;;  %v331_v3 = vpack.c.bf16 %v138_v58, %v138_v58  ;;  %v1070_v1 = vmul.f32 %v186_v51, %v138_v58  ;;  %v382_v30 = vunpack.c.l.bf16 %v1065_v60 }
  0xaa   :  { %v197_v4 = vmul.f32 %v1047_v37, %v196_v61  ;;  %v116_v5 = vsub.f32 1.5, %v115_v62  ;;  %225 = vmatpush.bf16.xpose.msra.mxu1 %v204_v63  ;;  %238 = vmatpush.bf16.xpose.msra.mxu2 %v204_v63  ;;  %v254_v9 = vunpack.c.l.bf16 %v204_v63 }
  0xab   :  { %v149_v11 = vmul.f32 %v726_v40, %v148_v0  ;;  %340 = vmatpush.bf16.xpose.msra.mxu3 %v331_v3  ;;  %v381_v19 = vunpack.c.l.bf16 %v331_v3  ;;  %v389_v32 = vmul.f32 %v382_v30, %v382_v30 }
  0xac   :  { %v117_v12 = vmul.f32 %v728_v44, %v116_v5  ;;  %v261_v13 = vmul.f32 %v254_v9, %v254_v9  ;;  %v201_v15 = vsel %vm1080_vm15, %v1047_v37, %v197_v4 }
  0xad   :  { %v153_v14 = vsel %vm1074_vm13, %v726_v40, %v149_v11  ;;  %v202_v21 = vmul.f32 %v201_v15, %v1029_v6 }
  0xae   :  { %v154_v16 = vmul.f32 %v153_v14, %v1031_v7  ;;  %v121_v17 = vsel %vm120_vm1, %v728_v44, %v117_v12  ;;  %262 = vadd.xlane.f32.xlu1 %v261_v13  ;;  %v383_v7 = vmul.f32 %v381_v19, %v381_v19 }
  0xaf   :  { %v122_v18 = vmul.f32 %v121_v17, %v1033_v8  ;;  %v460_v25 = vpack.c.bf16 %v202_v21, %v202_v21  ;;  %v617_v29 = vmul.f32 %v202_v21, %v1062_v54 }
  0xb0   :  { %v459_v20 = vpack.c.bf16 %v154_v16, %v154_v16  ;;  %v571_v8 = vmul.f32 %v202_v21, %v154_v16  ;;  %v609_v6 = vmul.f32 %v1062_v54, %v154_v16 }
  0xb1   :  { %239 = vmatmul.bf16.vlgmr.msra.gmra.mxu2 %v204_v63  ;;  %v595_v22 = vmul.f32 %v154_v16, %v122_v18  ;;  %v316_v23 = vmul.f32 %v1062_v54, %v122_v18  ;;  %v203_v24 = vpack.c.bf16 %v122_v18, %v122_v18  ;;  %v603_v28 = vmul.f32 %v202_v21, %v122_v18 }
  0xb2   :  { %366 = vmatpush.bf16.xpose.msrb.mxu1 %v1065_v60  ;;  %341 = vmatmul.bf16.vlgmr.msra.gmra.mxu3 %v331_v3  ;;  %v509_v26 = vunpack.c.l.bf16 %v459_v20  ;;  %v510_v34 = vunpack.c.l.bf16 %v460_v25 }
  0xb3   :  { %468 = vmatpush.bf16.xpose.msrb.mxu2 %v459_v20  ;;  %596 = vadd.xlane.f32.xlu2 %v595_v22  ;;  %v253_v31 = vunpack.c.l.bf16 %v203_v24 }
  0xb4   :  { %317 = vadd.xlane.f32.xlu0 %v316_v23  ;;  %212 = vmatpush.bf16.xpose.msra.mxu0 %v203_v24  ;;  %v511_v27 = vmul.f32 %v509_v26, %v509_v26  ;;  %v517_v35 = vmul.f32 %v510_v34, %v510_v34 }
  0xb5   :  { %226 = vmatmul.bf16.vlgmr.msra.gmra.mxu1 %v203_v24  ;;  %481 = vmatpush.bf16.xpose.msrb.mxu3 %v460_v25  ;;  %v255_v33 = vmul.f32 %v253_v31, %v253_v31 }
  0xb6   :  { %384 = vadd.xlane.f32.xlu1 %v383_v7 }
  0xbb   :  { %213 = vmatmul.bf16.vlgmr.msra.gmra.mxu0 %v203_v24  ;;  %572 = vadd.xlane.f32.xlu2 %v571_v8 }
  0xbc   :  { %353 = vmatpush.bf16.xpose.msrb.mxu0 %v1065_v60  ;;  %610 = vadd.xlane.f32.xlu0 %v609_v6 }
  0xbe   :  { %512 = vadd.xlane.f32.xlu1 %v511_v27 }
  0xc1   :  { %469 = vmatmul.bf16.vlgmr.msrb.gmra.mxu2 %v459_v20 }
  0xc2   :  { %482 = vmatmul.bf16.vlgmr.msrb.gmra.mxu3 %v459_v20 }
  0xc3   :  { %604 = vadd.xlane.f32.xlu2 %v603_v28 }
  0xc4   :  { %494 = vmatpush.bf16.xpose.msra.mxu0 %v460_v25  ;;  %618 = vadd.xlane.f32.xlu0 %v617_v29 }
  0xc5   :  { %367 = vmatmul.bf16.vlgmr.msrb.gmra.mxu1 %v1065_v60 }
  0xcb   :  { %354 = vmatmul.bf16.vlgmr.msrb.gmra.mxu0 %v331_v3  ;;  %390 = vadd.xlane.f32.xlu2 %v389_v32 }
  0xcc   :  { %256 = vadd.xlane.f32.xlu0 %v255_v33 }
  0xd3   :  { %518 = vadd.xlane.f32.xlu2 %v517_v35 }
  0xdb   :  { %495 = vmatmul.bf16.vlgmr.msra.gmra.mxu0 %v460_v25 }
 0x126   :  { %v597_v36 = vpop.xlane.xlu2 %596 }
 0x127   :  { %v318_v37 = vpop.xlane.xlu0 %317  ;;  %v598_v38 = vmul.f32 2.0, %v597_v36 }
 0x128   :  { %v1100_v39 = vmul.f32 2.0, %v318_v37 }
 0x129   :  { %v599_v40 = vmul.f32 1.442695, %v598_v38 }
 0x12a   :  { %v601_v41 = vmul.f32 1.442695, %v1100_v39 }
 0x12b   :  { %729 = vpow2.f32 %v599_v40 }
 0x12c   :  { %731 = vpow2.f32 %v601_v41 }
 0x12e   :  { %v573_v42 = vpop.xlane.xlu2 %572 }
 0x12f   :  { %v1103_v43 = vmul.f32 2.0, %v573_v42  ;;  %v611_v44 = vpop.xlane.xlu0 %610 }
 0x130   :  { %v612_v45 = vmul.f32 2.0, %v611_v44 }
 0x131   :  { %v730_v46 = vpop.eup %729  ;;  %v615_v47 = vmul.f32 1.442695, %v1103_v43 }
 0x132   :  { %v227_v48 = vpop.f32.mrf.mxu1  ;;  %v732_v49 = vpop.eup %731  ;;  %v613_v50 = vmul.f32 1.442695, %v612_v45 }
 0x133   :  { %v247_v51 = vmul.f32 2.0, %v227_v48  ;;  %733 = vpow2.f32 %v615_v47  ;;  %v623_v52 = vadd.f32 %v732_v49, %v730_v46 }
 0x134   :  { %735 = vpow2.f32 %v613_v50  ;;  %v240_v54 = vpop.f32.mrf.mxu2 }
 0x135   :  { %v248_v53 = vmul.f32 1.442695, %v247_v51  ;;  %v1106_v55 = vpop.f32.mrf.mxu3  ;;  %v250_v4 = vmul.f32 2.0, %v240_v54 }
 0x136   :  { %v605_v56 = vpop.xlane.xlu2 %604 }
 0x137   :  { %737 = vpow2.f32 %v248_v53  ;;  %v606_v57 = vmul.f32 2.0, %v605_v56  ;;  %v619_v58 = vpop.xlane.xlu0 %618  ;;  %v251_v16 = vmul.f32 1.442695, %v250_v4 }
 0x138   :  { %v620_v59 = vmul.f32 2.0, %v619_v58  ;;  %v214_v60 = vpop.f32.mrf.mxu0 }
 0x139   :  { %v734_v61 = vpop.eup %733  ;;  %v607_v62 = vmul.f32 1.442695, %v606_v57  ;;  %v244_v63 = vmul.f32 2.0, %v214_v60 }
 0x13a   :  { %v229_v0 = vpop.f32.mrf.mxu1  ;;  %v736_v3 = vpop.eup %735  ;;  %v621_v2 = vmul.f32 1.442695, %v620_v59 }
 0x13b   :  { %v635_v5 = vadd.f32 %v736_v3, %v730_v46  ;;  %v647_v9 = vadd.f32 %v736_v3, %v732_v49  ;;  %739 = vpow2.f32 %v607_v62  ;;  %v245_v10 = vmul.f32 1.442695, %v244_v63 }
 0x13c   :  { %741 = vpow2.f32 %v621_v2  ;;  %v242_v12 = vpop.f32.mrf.mxu2 }
 0x13d   :  { %v738_v11 = vpop.eup %737  ;;  %v636_v13 = vadd.f32 %v734_v61, %v635_v5  ;;  %743 = vpow2.f32 %v245_v10  ;;  %v344_v14 = vpop.f32.mrf.mxu3 }
 0x13e   :  { %267 = vxpose.xlu2.b32.start.end [1/1] (short) (narrow) %v738_v11, 8  ;;  %v306_v15 = vsel %vm299_vm2, %v738_v11, 0.0 }
 0x13f   :  { %307 = vadd.xlane.f32.xlu0 %v306_v15  ;;  %745 = vlog2.f32 %v636_v13 }
 0x140   :  { %v216_v17 = vpop.f32.mrf.mxu0  ;;  %747 = vpow2.f32 %v251_v16 }
 0x141   :  { %v740_v18 = vpop.eup %739 }
 0x142   :  { %v1109_v19 = vpop.f32.mrf.mxu1  ;;  %v742_v20 = vpop.eup %741  ;;  %v624_v21 = vadd.f32 %v740_v18, %v623_v52  ;;  %v659_v22 = vadd.f32 %v740_v18, %v734_v61 }
 0x143   :  { %v744_v23 = vpop.eup %743  ;;  %v648_v24 = vadd.f32 %v742_v20, %v647_v9 }
 0x144   :  { %749 = vlog2.f32 %v624_v21  ;;  %v660_v25 = vadd.f32 %v742_v20, %v659_v22  ;;  %v303_v7 = vsel %vm299_vm2, %v744_v23, 0.0  ;;  %v1112_v8 = vpop.f32.mrf.mxu2 }
 0x145   :  { %v746_v6 = vpop.eup %745  ;;  %751 = vlog2.f32 %v648_v24  ;;  %304 = vadd.xlane.f32.xlu1 %v303_v7  ;;  %v483_v26 = vpop.f32.mrf.mxu3 }
 0x146   :  { %v638_v27 = vmul.f32 0.6931472, %v746_v6  ;;  %753 = vlog2.f32 %v660_v25  ;;  %v748_v30 = vpop.eup %747  ;;  %v503_v22 = vmul.f32 2.0, %v483_v26  ;;  %v372_v25 = vmul.f32 2.0, %v1106_v55  ;;  %v263_v7 = vpop.xlane.xlu1 %262 }
 0x147   :  { %v311_v42 = vsel %vm299_vm2, %v748_v30, 0.0  ;;  %v257_v30 = vpop.xlane.xlu0 %256 }
 0x148   :  { %v639_v28 = vsub.f32 %v638_v27, %v1103_v43  ;;  %v355_v29 = vpop.f32.mrf.mxu0  ;;  %v504_v23 = vmul.f32 1.442695, %v503_v22  ;;  %v373_v6 = vmul.f32 1.442695, %v372_v25 }
 0x149   :  { %v375_v31 = vmul.f32 2.0, %v355_v29 }
 0x14a   :  { %v370_v32 = vpop.f32.mrf.mxu1  ;;  %v750_v33 = vpop.eup %749  ;;  %v640_v34 = vrot.slane %v639_v28, 4 }
 0x14b   :  { %v752_v35 = vpop.eup %751  ;;  %v626_v36 = vmul.f32 0.6931472, %v750_v33  ;;  %v376_v37 = vmul.f32 1.442695, %v375_v31 }
 0x14c   :  { %v754_v38 = vpop.eup %753  ;;  %v641_v40 = vadd.f32 %v640_v34, %v639_v28  ;;  %v650_v41 = vmul.f32 0.6931472, %v752_v35  ;;  %v472_v44 = vpop.f32.mrf.mxu2  ;;  %v378_v34 = vmul.f32 2.0, %v1109_v19 }
 0x14d   :  { %v627_v45 = vsub.f32 %v626_v36, %v1100_v39  ;;  %v662_v46 = vmul.f32 0.6931472, %v754_v38  ;;  %755 = vpow2.f32 %v376_v37  ;;  %312 = vadd.xlane.f32.xlu1 %v311_v42  ;;  %v485_v47 = vpop.f32.mrf.mxu3  ;;  %v391_v35 = vpop.xlane.xlu2 %390  ;;  %v500_v38 = vmul.f32 2.0, %v1112_v8 }
 0x14e   :  { %v642_v48 = vrot.slane %v641_v40, 2  ;;  %v651_v49 = vsub.f32 %v650_v41, %v1100_v39  ;;  %757 = vpow2.f32 %v504_v23  ;;  %v385_v27 = vpop.xlane.xlu1 %384  ;;  %v379_v36 = vmul.f32 1.442695, %v378_v34 }
 0x14f   :  { %v628_v50 = vrot.slane %v627_v45, 4  ;;  %v663_v51 = vsub.f32 %v662_v46, %v1103_v43  ;;  %759 = vpow2.f32 %v373_v6  ;;  %v501_v41 = vmul.f32 1.442695, %v500_v38 }
 0x150   :  { %v652_v52 = vrot.slane %v651_v49, 4  ;;  %v357_v53 = vpop.f32.mrf.mxu0  ;;  %v643_v54 = vadd.f32 %v642_v48, %v641_v40  ;;  %761 = vpow2.f32 %v379_v36  ;;  %v386_v19 = vmul.f32 2.0, %v385_v27 }
 0x151   :  { %v629_v56 = vadd.f32 %v628_v50, %v627_v45  ;;  %v664_v57 = vrot.slane %v663_v51, 4  ;;  %763 = vpow2.f32 %v501_v41 }
 0x152   :  { %v653_v58 = vadd.f32 %v652_v52, %v651_v49  ;;  %v644_v0 = vrot.slane %v643_v54, 1  ;;  %v387_v47 = vmul.f32 1.442695, %v386_v19 }
 0x153   :  { %v756_v59 = vpop.eup %755  ;;  %v630_v60 = vrot.slane %v629_v56, 2  ;;  %v665_v61 = vadd.f32 %v664_v57, %v663_v51 }
 0x154   :  { %v654_v62 = vrot.slane %v653_v58, 2  ;;  %v433_v63 = vsel %vm299_vm2, %v756_v59, 0.0  ;;  %v645_v12 = vadd.f32 %v644_v0, %v643_v54  ;;  %v758_v24 = vpop.eup %757  ;;  %765 = vpow2.f32 %v387_v47 }
 0x155   :  { %v631_v3 = vadd.f32 %v630_v60, %v629_v56  ;;  %v666_v4 = vrot.slane %v665_v61, 2  ;;  %434 = vadd.xlane.f32.xlu0 %v433_v63  ;;  %v760_v28 = vpop.eup %759  ;;  %v519_v55 = vpop.xlane.xlu2 %518  ;;  %v258_v63 = vmul.f32 2.0, %v257_v30 }
 0x156   :  { %v655_v2 = vadd.f32 %v654_v62, %v653_v58  ;;  %v430_v29 = vsel %vm299_vm2, %v760_v28, 0.0  ;;  %v1124_v31 = vpop.xlane.xlu1 %512  ;;  %v762_v37 = vpop.eup %761  ;;  %v264_v62 = vmul.f32 2.0, %v263_v7 }
 0x157   :  { %v632_v5 = vrot.slane %v631_v3, 1  ;;  %v667_v9 = vadd.f32 %v666_v4, %v665_v61  ;;  %v438_v40 = vsel %vm299_vm2, %v762_v37, 0.0  ;;  %v764_v45 = vpop.eup %763  ;;  %v561_v61 = vsel %vm299_vm2, %v758_v24, 0.0 }
 0x158   :  { %v656_v10 = vrot.slane %v655_v2, 1  ;;  %v496_v11 = vpop.f32.mrf.mxu0  ;;  %v558_v46 = vsel %vm299_vm2, %v764_v45, 0.0  ;;  %v265_v0 = vmul.f32 1.442695, %v264_v62  ;;  %v514_v23 = vmul.f32 2.0, %v1124_v31 }
 0x159   :  { %v633_v13 = vadd.f32 %v632_v5, %v631_v3  ;;  %v668_v14 = vrot.slane %v667_v9, 1  ;;  %v506_v48 = vmul.f32 2.0, %v496_v11  ;;  %v259_v3 = vmul.f32 1.442695, %v258_v63 }
 0x15a   :  { %v657_v16 = vadd.f32 %v656_v10, %v655_v2  ;;  %v766_v53 = vpop.eup %765  ;;  %v515_v7 = vmul.f32 1.442695, %v514_v23 }
 0x15b   :  { %v646_v15 = vadd.f32 %v645_v12, %v633_v13  ;;  %v669_v18 = vadd.f32 %v668_v14, %v667_v9  ;;  %v507_v8 = vmul.f32 1.442695, %v506_v48  ;;  %v323_v14 = vmul.f32 2.0, %v1100_v39 }
 0x15d   :  { %v658_v17 = vadd.f32 %v657_v16, %v646_v15  ;;  %767 = vpow2.f32 %v507_v8 }
 0x15e   :  { %769 = vpow2.f32 %v265_v0 }
 0x15f   :  { %v1120_v20 = vadd.f32 %v669_v18, %v658_v17  ;;  %771 = vpow2.f32 %v259_v3  ;;  %v392_v17 = vmul.f32 2.0, %v391_v35 }
 0x160   :  { %v498_v21 = vpop.f32.mrf.mxu0 }
 0x161   :  { %v393_v18 = vmul.f32 1.442695, %v392_v17 }
 0x163   :  { %v768_v58 = vpop.eup %767 }
 0x164   :  { %v770_v2 = vpop.eup %769 }
 0x165   :  { %v772_v9 = vpop.eup %771 }
 0x17e   :  { %523 = vxpose.xlu0.b32.start.end [1/1] (short) (narrow) %v758_v24, 8  ;;  %v520_v24 = vmul.f32 2.0, %v519_v55 }
 0x180   :  { %v521_v6 = vmul.f32 1.442695, %v520_v24 }
 0x187   :  { %395 = vxpose.xlu1.b32.start.end [1/1] (short) (narrow) %v756_v59, 8 }
 0x1af   :  { %431 = vadd.xlane.f32.xlu2 %v430_v29 }
 0x1b2   :  { %v308_v32 = vpop.xlane.xlu0 %307 }
 0x1b8   :  { %v305_v26 = vpop.xlane.xlu1 %304 }
 0x1b9   :  { %v309_v33 = vadd.f32 %v308_v32, %v305_v26 }
 0x1bb   :  { %v310_v10 = vsub.f32 %v309_v33, %v772_v9 }
 0x1c0   :  { %v313_v54 = vpop.xlane.xlu1 %312 }
 0x1c8   :  { %v435_v49 = vpop.xlane.xlu0 %434 }
 0x1d7   :  { %v283_v42 = vpop.trf.xlu2 }
 0x1d8   :  { %v300_v44 = vsel %vm299_vm2, %v283_v42, 0.0 }
 0x1e7   :  { %439 = vadd.xlane.f32.xlu1 %v438_v40  ;;  %v961_v40 = vmov 32.0  }
 0x1ef   :  { %301 = vadd.xlane.f32.xlu0 %v300_v44  ;;  %v962_v44 = vmov 16.0  }
 0x1f7   :  { %559 = vadd.xlane.f32.xlu0 %v558_v46 }
 0x1ff   :  { %444 = vadd.xlane.f32.xlu0 %v1070_v1  ;;  %v566_v1 = vsel %vm299_vm2, %v768_v58, 0.0  ;;  %v578_v58 = vmul.f32 2.0, %v1103_v43 }
 0x222   :  { %v432_v50 = vpop.xlane.xlu2 %431  ;;  %v539_v52 = vpop.trf.xlu0 }
 0x223   :  { %v436_v51 = vadd.f32 %v435_v49, %v432_v50  ;;  %v555_v56 = vsel %vm299_vm2, %v539_v52, 0.0 }
 0x224   :  { %556 = vadd.xlane.f32.xlu2 %v555_v56 }
 0x225   :  { %v437_v57 = vsub.f32 %v436_v51, %v766_v53 }
 0x22b   :  { %v411_v59 = vpop.trf.xlu1 }
 0x22c   :  { %567 = vadd.xlane.f32.xlu2 %v566_v1  ;;  %v427_v60 = vsel %vm299_vm2, %v411_v59, 0.0 }
 0x22d   :  { %428 = vadd.xlane.f32.xlu1 %v427_v60 }
 0x235   :  { %562 = vadd.xlane.f32.xlu1 %v561_v61 }
 0x25a   :  { %v440_v21 = vpop.xlane.xlu1 %439 }
 0x262   :  { %v302_v4 = vpop.xlane.xlu0 %301 }
 0x263   :  { %v314_v5 = vadd.f32 %v313_v54, %v302_v4 }
 0x265   :  { %v315_v11 = vsub.f32 %v314_v5, %v770_v2 }
 0x267   :  { %v319_v12 = vmul.f32 %v315_v11, %v310_v10 }
 0x269   :  { %773 = vlog2.f32 %v319_v12 }
 0x26a   :  { %775 = vpow2.f32 %v393_v18  ;;  %v560_v25 = vpop.xlane.xlu0 %559 }
 0x26b   :  { %777 = vpow2.f32 %v515_v7 }
 0x26c   :  { %779 = vpow2.f32 %v521_v6 }
 0x26f   :  { %v774_v13 = vpop.eup %773 }
 0x270   :  { %v321_v15 = vmul.f32 0.6931472, %v774_v13  ;;  %v776_v29 = vpop.eup %775 }
 0x271   :  { %v778_v36 = vpop.eup %777 }
 0x272   :  { %v324_v16 = vsub.f32 %v321_v15, %v323_v14  ;;  %v445_v26 = vpop.xlane.xlu0 %444  ;;  %v780_v37 = vpop.eup %779 }
 0x273   :  { %v449_v55 = vmul.f32 2.0, %v445_v26 }
 0x274   :  { %v325_v34 = vrot.slane %v324_v16, 4 }
 0x275   :  { %v450_v19 = vmul.f32 2.0, %v449_v55 }
 0x276   :  { %v326_v42 = vadd.f32 %v325_v34, %v324_v16 }
 0x278   :  { %v327_v48 = vrot.slane %v326_v42, 2 }
 0x27a   :  { %v328_v52 = vadd.f32 %v327_v48, %v326_v42 }
 0x27c   :  { %v329_v60 = vrot.slane %v328_v52, 1 }
 0x27e   :  { %v330_v2 = vadd.f32 %v329_v60, %v328_v52 }
 0x297   :  { %v557_v22 = vpop.xlane.xlu2 %556 }
 0x29f   :  { %v568_v39 = vpop.xlane.xlu2 %567 }
 0x2a0   :  { %v429_v27 = vpop.xlane.xlu1 %428  ;;  %v569_v33 = vadd.f32 %v568_v39, %v557_v22 }
 0x2a1   :  { %v441_v28 = vadd.f32 %v440_v21, %v429_v27 }
 0x2a2   :  { %v570_v38 = vsub.f32 %v569_v33, %v780_v37 }
 0x2a3   :  { %v442_v30 = vsub.f32 %v441_v28, %v776_v29 }
 0x2a5   :  { %v446_v32 = vmul.f32 %v442_v30, %v437_v57 }
 0x2a7   :  { %781 = vlog2.f32 %v446_v32 }
 0x2a8   :  { %v563_v35 = vpop.xlane.xlu1 %562  ;;  %783 = vrcp.f32 %v961_v40 }
 0x2a9   :  { %v564_v31 = vadd.f32 %v563_v35, %v560_v25  ;;  %785 = vrcp.f32 %v962_v44 }
 0x2ab   :  { %v565_v41 = vsub.f32 %v564_v31, %v778_v36 }
 0x2ad   :  { %v782_v45 = vpop.eup %781  ;;  %v574_v46 = vmul.f32 %v570_v38, %v565_v41 }
 0x2ae   :  { %v448_v47 = vmul.f32 0.6931472, %v782_v45  ;;  %v784_v8 = vpop.eup %783 }
 0x2af   :  { %787 = vlog2.f32 %v574_v46  ;;  %v786_v50 = vpop.eup %785  ;;  %v672_v57 = vmul.f32 32.0, %v784_v8  ;;  %vm676_vm4 = vweird.f32 %v784_v8 }
 0x2b0   :  { %v451_v49 = vsub.f32 %v448_v47, %v450_v19  ;;  %v588_v56 = vmul.f32 16.0, %v786_v50  ;;  %vm592_vm3 = vweird.f32 %v786_v50 }
 0x2b1   :  { %v673_v0 = vsub.f32 1.0, %v672_v57 }
 0x2b2   :  { %v452_v51 = vrot.slane %v451_v49, 4  ;;  %v589_v63 = vsub.f32 1.0, %v588_v56 }
 0x2b3   :  { %v674_v11 = vmul.f32 %v784_v8, %v673_v0 }
 0x2b4   :  { %v453_v53 = vadd.f32 %v452_v51, %v451_v49  ;;  %v590_v10 = vmul.f32 %v786_v50, %v589_v63 }
 0x2b5   :  { %v788_v54 = vpop.eup %787  ;;  %v675_v16 = vadd.f32 %v784_v8, %v674_v11 }
 0x2b6   :  { %v454_v59 = vrot.slane %v453_v53, 2  ;;  %v576_v1 = vmul.f32 0.6931472, %v788_v54  ;;  %v591_v15 = vadd.f32 %v786_v50, %v590_v10 }
 0x2b7   :  { %v677_v21 = vsel %vm676_vm4, %v784_v8, %v675_v16 }
 0x2b8   :  { %v455_v61 = vadd.f32 %v454_v59, %v453_v53  ;;  %v579_v62 = vsub.f32 %v576_v1, %v578_v58  ;;  %v593_v18 = vsel %vm592_vm3, %v786_v50, %v591_v15  ;;  %v678_v23 = vmul.f32 %v677_v21, %v1120_v20 }
 0x2ba   :  { %v456_v3 = vrot.slane %v455_v61, 1  ;;  %v580_v4 = vrot.slane %v579_v62, 4 }
 0x2bc   :  { %v457_v5 = vadd.f32 %v456_v3, %v455_v61  ;;  %v581_v9 = vadd.f32 %v580_v4, %v579_v62 }
 0x2be   :  { %v458_v12 = vadd.f32 %v457_v5, %v330_v2  ;;  %v582_v13 = vrot.slane %v581_v9, 2 }
 0x2c0   :  { %v583_v14 = vadd.f32 %v582_v13, %v581_v9 }
 0x2c2   :  { %v584_v43 = vrot.slane %v583_v14, 1 }
 0x2c4   :  { %v585_v17 = vadd.f32 %v584_v43, %v583_v14 }
 0x2c6   :  { %v586_v22 = vadd.f32 %v585_v17, %v458_v12 }
 0x2c8   :  { %v594_v24 = vmul.f32 %v593_v18, %v586_v22 }
 0x2ca   :  { %v679_v25 = vadd.f32 %v678_v23, %v594_v24 }
 0x2cc   :  { %681 = vst.msk [vmem:[#allocation2] sm:$0x1] %vm680_vm5, %v679_v25 }
 0x2d3   :  { %v682_v7 = vld [vmem:[#allocation2] sm:$0x1] }
 0x2d4   :  { %705 = vpush %v682_v7 }
 0x305   :  { %s706_s24 = spop %705 }
 0x306   :  { %685 = sst [smem:[#allocation14]] %s706_s24 }
 0x307   :  { %694 = dma.smem_to_hbm %s963_s25, 16, %s692_s23, [#allocation5]  }
 0x308   :  { %953 = dma.done.wait [#allocation5], 16  }
 0x309   :  { %954 = vsyncadd [#allocation5], 4294967280 }
 0x30a   :  { %699 = sfence }
 0x30b   :  { %700 = vsyncpa [#allocation4], 1 }
 0x30c   :  { %701 = vsyncpa [#allocation7], 1 }
 0x30d   :  { %702 = vsyncpa [#allocation10], 1 }
 0x30e   :  { %703 = vsyncpa [#allocation13], 1 }
 0x30f   :  { %704 = vsyncpa [#allocation5], 1 }

</bundles_post_ra>
